<compile_context>
chip_gen: v7x
topology: tpu7x:2x2x1
jax: 0.10.0
libtpu: 0.0.40
codegen_flags: <defaults>
</compile_context>

<pallas_src>
import functools

import jax
import jax.numpy as jnp
from jax import lax
from jax.experimental import pallas as pl
from jax.experimental.pallas import tpu as pltpu


def _round_up(n: int, m: int) -> int:
    return -(-n // m) * m


def _cdiv(a: int, b: int) -> int:
    return -(-a // b)


def _block_diag(w, g: int):
    """g-way block-diagonal replication of a (out, in) weight matrix (wrapper-side, tiny)."""
    if g == 1:
        return w
    o, i = w.shape
    out = jnp.zeros((g * o, g * i), w.dtype)
    for j in range(g):
        out = lax.dynamic_update_slice(out, w, (j * o, j * i))
    return out


def _vmem_budget_and_limit():
    """(working-set budget used for tile sizing, vmem_limit_bytes), per TPU generation."""
    cap = 64 << 20  # conservative default: v7x physical VMEM per TensorCore
    try:
        info = pltpu.get_tpu_info()
        cap = int(getattr(info, "vmem_capacity_bytes", cap)) or cap
    except Exception:
        pass
    if cap >= (128 << 20):          # v5e / v6e: 128 MiB physical VMEM
        return 48 << 20, 112 << 20
    return 22 << 20, 48 << 20       # v7x (64 MiB) or unknown: stay well clear of physical


def _mlp_kernel(x_ref, w1_ref, b1_ref, w2_ref, b2_ref, w3_ref, b3_ref, o_ref, *, g):
    """One batch tile.

    x_ref : (tbf, g*F)    cdt   g folded batch rows per sublane row
    w1_ref: (g*64, g*F)   cdt   block-diag fc1
    b1_ref: (g*64, 1)     f32
    w2_ref: (g*32, g*64)  cdt   block-diag fc2
    b2_ref: (g*32, 1)     f32
    w3_ref: (g*32, 1)     f32   fc3 weights replicated per fold group, as a column
    b3_ref: (g, 1)        f32
    o_ref : (1, g, tbf)   f32   o[0, j, r] = output for batch row g*r + j of this tile
    """
    # fc1: contract the folded feature axes of W1f (g*64, g*F) and x (tbf, g*F)
    # -> W1f @ x^T with batch on the lane axis (trans-B matmul, no transpose of x).
    dn = (((1,), (1,)), ((), ()))
    h1 = lax.dot_general(w1_ref[...], x_ref[...], dn,
                         preferred_element_type=jnp.float32)
    h1 = jnp.maximum(h1 + b1_ref[...], 0.0)                       # (g*64, tbf) f32
    # fc2: (g*32, g*64) @ (g*64, tbf) -> (g*32, tbf).
    h2 = jnp.dot(w2_ref[...], h1.astype(w2_ref.dtype),
                 preferred_element_type=jnp.float32)
    h2 = jnp.maximum(h2 + b2_ref[...], 0.0)                       # (g*32, tbf) f32
    # fc3: one output row per sub-batch -> keep it off the MXU.  VPU multiply by the
    # replicated w3 column, then a 32-sublane reduction (XLU) per fold group.
    # TODO(synk): if ld/st slots saturate after the fold, chunk the lane axis in-kernel.
    zf = h2 * w3_ref[...]                                         # (g*32, tbf) f32
    b3 = b3_ref[...]                                              # (g, 1) f32
    for j in range(g):                                            # g <= 8, unrolled
        zj = jnp.sum(zf[32 * j:32 * (j + 1), :], axis=0, keepdims=True) + b3[j:j + 1, :]
        o_ref[0, j:j + 1, :] = jax.nn.sigmoid(zj).astype(o_ref.dtype)


@functools.partial(jax.jit, static_argnames=("block_b",))
def binary_simple_nn(x, w1, b1, w2, b2, w3, b3, *, block_b=None):
    """Forward pass of BinarySimpleNN.

    x : (B, input_size)   float32 or bfloat16
    w1: (64, input_size)  b1: (64, 1)     (PyTorch nn.Linear weight layout)
    w2: (32, 64)          b2: (32, 1)
    w3: (1, 32)           b3: (1, 1)
    block_b: optional cap on batch rows per grid tile (mostly for testing).
    returns (B, 1) float32
    """
    B, F = x.shape
    cdt = x.dtype
    isz = jnp.dtype(cdt).itemsize

    # ---- MXU-occupancy fold factor: pack g consecutive batch rows into one folded row. --
    g = max(1, min(8, 128 // F)) if F <= 128 else 1

    # ---- Batch tiling from an explicit VMEM budget (lane padding of the x tile incl.). --
    budget, vmem_limit = _vmem_budget_and_limit()
    per_col = (2 * _round_up(g * F, 128) * isz      # double-buffered x tile (lane-padded)
               + g * 96 * (4 + isz)                 # h1/h2 f32 + their MXU-input-dtype copies
               + g * 4 * 3)                         # z + double-buffered output slab
    tbf_max = max(128, (budget // per_col) // 128 * 128)
    if block_b is not None:
        tbf_max = min(tbf_max, max(128, (block_b // g) // 128 * 128))

    num_tiles = _cdiv(B, tbf_max * g)
    if num_tiles == 1 and B > 2 * 128 * g:
        num_tiles = 2                               # feed both v7x TCs / give the pipeline steps
    tbf = max(128, _round_up(_cdiv(B, num_tiles * g), 128))   # folded columns per tile
    tb = tbf * g                                    # batch rows per tile (128*g aligned)
    b_pad = num_tiles * tb

    if b_pad != B:
        # Pallas has no VMEM bounds checks: zero-pad the ragged tail (finite through
        # relu/sigmoid, sliced off below).  Waste bounded to < 128*g rows per tile.
        x = jnp.pad(x, ((0, b_pad - B), (0, 0)))
    x_fold = x.reshape(b_pad // g, g * F)           # free row-major view (no copy)

    # ---- Weight prep (tiny): block-diagonal fold + dtype plumbing. ----
    w1f = _block_diag(w1, g).astype(cdt)                              # (g*64, g*F)
    w2f = _block_diag(w2, g).astype(cdt)                              # (g*32, g*64)
    b1f = jnp.tile(b1.astype(jnp.float32), (g, 1))                    # (g*64, 1)
    b2f = jnp.tile(b2.astype(jnp.float32), (g, 1))                    # (g*32, 1)
    w3c = jnp.tile(w3.astype(jnp.float32).reshape(32, 1), (g, 1))     # (g*32, 1)
    b3f = jnp.tile(b3.astype(jnp.float32), (g, 1))                    # (g, 1)

    # Constant index_map -> params stay VMEM-resident across grid steps.
    const = lambda a: pl.BlockSpec(a.shape, lambda i: (0, 0))

    param_bytes = sum(int(p.size) * jnp.dtype(p.dtype).itemsize
                      for p in (w1f, b1f, w2f, b2f, w3c, b3f))
    cost = pl.CostEstimate(
        flops=2 * b_pad * (F * 64 + 64 * 32 + 32),
        transcendentals=b_pad,
        bytes_accessed=b_pad * (F * isz + 4) + param_bytes)

    out = pl.pallas_call(
        functools.partial(_mlp_kernel, g=g),
        out_shape=jax.ShapeDtypeStruct((num_tiles, g, tbf), jnp.float32),
        grid=(num_tiles,),
        in_specs=[
            pl.BlockSpec((tbf, g * F), lambda i: (i, 0)),    # streamed folded batch tiles
            const(w1f), const(b1f), const(w2f), const(b2f), const(w3c), const(b3f),
        ],
        out_specs=pl.BlockSpec((1, g, tbf), lambda i: (i, 0, 0)),   # lane-dense output slab
        compiler_params=pltpu.CompilerParams(
            dimension_semantics=("parallel",),   # shard batch tiles across TCs on v7x
            vmem_limit_bytes=vmem_limit),
        cost_estimate=cost,
    )(x_fold, w1f, b1f, w2f, b2f, w3c, b3f)

    # out[t, j, r] is batch row t*tb + g*r + j: un-interleave (tiny, B f32 elements),
    # flatten, drop padded rows.
    return jnp.transpose(out, (0, 2, 1)).reshape(b_pad, 1)[:B]


def init_params(key, input_size):
    """Deterministic init mimicking nn.Linear default (U[-1/sqrt(fan_in), +]), PyTorch layout."""
    def linear(k, fan_in, fan_out):
        kw, kb = jax.random.split(k)
        bound = 1.0 / jnp.sqrt(jnp.float32(fan_in))
        w = jax.random.uniform(kw, (fan_out, fan_in), jnp.float32, -bound, bound)
        b = jax.random.uniform(kb, (fan_out, 1), jnp.float32, -bound, bound)
        return w, b

    k1, k2, k3 = jax.random.split(key, 3)
    w1, b1 = linear(k1, input_size, 64)
    w2, b2 = linear(k2, 64, 32)
    w3, b3 = linear(k3, 32, 1)
    return w1, b1, w2, b2, w3, b3


if __name__ == "__main__":
    key = jax.random.PRNGKey(0)
    kx, kp = jax.random.split(key)

    input_size = 32
    params = init_params(kp, input_size)
    w1, b1, w2, b2, w3, b3 = params

    def reference(xv):
        h = jnp.maximum(xv @ w1.T + b1.T, 0.0)
        h = jnp.maximum(h @ w2.T + b2.T, 0.0)
        return jax.nn.sigmoid(h @ w3.T + b3.T)

    # 1) Small f32 batch (single tile; exercises the g=4 block-diagonal fold + off-MXU fc3).
    x = jax.random.normal(kx, (16, input_size), jnp.float32)
    out = jax.block_until_ready(binary_simple_nn(x, *params))
    assert out.shape == (16, 1)
    assert jnp.allclose(out, reference(x), atol=2e-5, rtol=2e-5)

    # 2) Ragged batch + multi-tile grid (tail padding, pipelined "parallel" grid, 2 tiles).
    x2 = jax.random.normal(kx, (1003, input_size), jnp.float32)
    out2 = jax.block_until_ready(binary_simple_nn(x2, *params, block_b=512))
    assert out2.shape == (1003, 1)
    assert jnp.allclose(out2, reference(x2), atol=2e-5, rtol=2e-5)

    # 3) bf16 inputs/weights (halves HBM traffic on v6e/v7x; f32 accumulation/activations).
    out3 = jax.block_until_ready(binary_simple_nn(x.astype(jnp.bfloat16), *params))
    assert out3.shape == (16, 1)
    assert float(jnp.max(jnp.abs(out3 - reference(x)))) < 5e-2

    print("KERNEL_OK")
</pallas_src>

<mosaic_0001>
module attributes {stable_mosaic.version = 11 : i64} {
  func.func @_mlp_kernel(%arg0: i32, %arg1: memref<128x128xf32, #tpu.memory_space<vmem>>, %arg2: memref<256x128xf32, #tpu.memory_space<vmem>>, %arg3: memref<256x1xf32, #tpu.memory_space<vmem>>, %arg4: memref<128x256xf32, #tpu.memory_space<vmem>>, %arg5: memref<128x1xf32, #tpu.memory_space<vmem>>, %arg6: memref<128x1xf32, #tpu.memory_space<vmem>>, %arg7: memref<4x1xf32, #tpu.memory_space<vmem>>, %arg8: memref<1x4x128xf32, #tpu.memory_space<vmem>>) attributes {dimension_semantics = [#tpu.dimension_semantics<parallel>], iteration_bounds = array<i64: 1>, scalar_prefetch = 0 : i64, scratch_operands = 0 : i64, tpu.core_type = #tpu.core_type<tc>, window_params = [{transform_indices = @transform_0, window_bounds = array<i64: 128, 128>}, {pipeline_mode = #tpu.pipeline_mode<synchronous>, transform_indices = @transform_1, window_bounds = array<i64: 256, 128>}, {pipeline_mode = #tpu.pipeline_mode<synchronous>, transform_indices = @transform_2, window_bounds = array<i64: 256, 1>}, {pipeline_mode = #tpu.pipeline_mode<synchronous>, transform_indices = @transform_3, window_bounds = array<i64: 128, 256>}, {pipeline_mode = #tpu.pipeline_mode<synchronous>, transform_indices = @transform_4, window_bounds = array<i64: 128, 1>}, {pipeline_mode = #tpu.pipeline_mode<synchronous>, transform_indices = @transform_5, window_bounds = array<i64: 128, 1>}, {pipeline_mode = #tpu.pipeline_mode<synchronous>, transform_indices = @transform_6, window_bounds = array<i64: 4, 1>}, {transform_indices = @transform_7, window_bounds = array<i64: 1, 4, 128>}]} {
    %c0 = arith.constant 0 : index
    %c0_0 = arith.constant 0 : index
    %0 = vector.load %arg2[%c0, %c0_0] : memref<256x128xf32, #tpu.memory_space<vmem>>, vector<256x128xf32>
    %c0_1 = arith.constant 0 : index
    %c0_2 = arith.constant 0 : index
    %1 = vector.load %arg1[%c0_1, %c0_2] : memref<128x128xf32, #tpu.memory_space<vmem>>, vector<128x128xf32>
    %cst = arith.constant dense<0.000000e+00> : vector<256x128xf32>
    %2 = tpu.matmul %0, %1, %cst {dimension_numbers = #tpu.dot_dimension_numbers<[1], [1], [0], [0], [0, 0, 1, 0], [], []>} : vector<256x128xf32>, vector<128x128xf32>, vector<256x128xf32> -> vector<256x128xf32>
    %c0_3 = arith.constant 0 : index
    %c0_4 = arith.constant 0 : index
    %3 = vector.load %arg3[%c0_3, %c0_4] : memref<256x1xf32, #tpu.memory_space<vmem>>, vector<256x1xf32>
    %4 = vector.broadcast %3 : vector<256x1xf32> to vector<256x128xf32>
    %5 = arith.addf %2, %4 : vector<256x128xf32>
    %cst_5 = arith.constant 0.000000e+00 : f32
    %6 = vector.broadcast %cst_5 : f32 to vector<256x128xf32>
    %7 = arith.maximumf %5, %6 : vector<256x128xf32>
    %c0_6 = arith.constant 0 : index
    %c0_7 = arith.constant 0 : index
    %8 = vector.load %arg4[%c0_6, %c0_7] : memref<128x256xf32, #tpu.memory_space<vmem>>, vector<128x256xf32>
    %cst_8 = arith.constant dense<0.000000e+00> : vector<128x128xf32>
    %9 = tpu.matmul %8, %7, %cst_8 {dimension_numbers = #tpu.dot_dimension_numbers<[1], [0], [0], [1], [0, 0, 1, 1], [], []>} : vector<128x256xf32>, vector<256x128xf32>, vector<128x128xf32> -> vector<128x128xf32>
    %c0_9 = arith.constant 0 : index
    %c0_10 = arith.constant 0 : index
    %10 = vector.load %arg5[%c0_9, %c0_10] : memref<128x1xf32, #tpu.memory_space<vmem>>, vector<128x1xf32>
    %11 = vector.broadcast %10 : vector<128x1xf32> to vector<128x128xf32>
    %12 = arith.addf %9, %11 : vector<128x128xf32>
    %cst_11 = arith.constant 0.000000e+00 : f32
    %13 = vector.broadcast %cst_11 : f32 to vector<128x128xf32>
    %14 = arith.maximumf %12, %13 : vector<128x128xf32>
    %c0_12 = arith.constant 0 : index
    %c0_13 = arith.constant 0 : index
    %15 = vector.load %arg6[%c0_12, %c0_13] : memref<128x1xf32, #tpu.memory_space<vmem>>, vector<128x1xf32>
    %16 = vector.broadcast %15 : vector<128x1xf32> to vector<128x128xf32>
    %17 = arith.mulf %14, %16 : vector<128x128xf32>
    %c0_14 = arith.constant 0 : index
    %c0_15 = arith.constant 0 : index
    %18 = vector.load %arg7[%c0_14, %c0_15] : memref<4x1xf32, #tpu.memory_space<vmem>>, vector<4x1xf32>
    %19 = vector.extract_strided_slice %17 {offsets = [0, 0], sizes = [32, 128], strides = [1, 1]} : vector<128x128xf32> to vector<32x128xf32>
    %cst_16 = arith.constant dense<0.000000e+00> : vector<128xf32>
    %20 = vector.multi_reduction <add>, %19, %cst_16 [0] : vector<32x128xf32> to vector<128xf32>
    %21 = vector.shape_cast %20 : vector<128xf32> to vector<1x128xf32>
    %22 = vector.extract_strided_slice %18 {offsets = [0, 0], sizes = [1, 1], strides = [1, 1]} : vector<4x1xf32> to vector<1x1xf32>
    %23 = vector.broadcast %22 : vector<1x1xf32> to vector<1x128xf32>
    %24 = arith.addf %21, %23 : vector<1x128xf32>
    %25 = arith.negf %24 : vector<1x128xf32>
    %26 = math.exp %25 : vector<1x128xf32>
    %cst_17 = arith.constant 1.000000e+00 : f32
    %27 = vector.broadcast %cst_17 : f32 to vector<1x128xf32>
    %28 = arith.addf %27, %26 : vector<1x128xf32>
    %29 = arith.divf %27, %28 : vector<1x128xf32>
    %c0_18 = arith.constant 0 : index
    %c0_19 = arith.constant 0 : index
    %c0_20 = arith.constant 0 : index
    %30 = vector.load %arg8[%c0_18, %c0_19, %c0_20] : memref<1x4x128xf32, #tpu.memory_space<vmem>>, vector<1x1x128xf32>
    %31 = vector.shape_cast %30 : vector<1x1x128xf32> to vector<1x128xf32>
    %32 = vector.shape_cast %29 : vector<1x128xf32> to vector<1x1x128xf32>
    tpu.vector_store %arg8[%c0_18, %c0_19, %c0_20], %32 {strides = array<i32>} : memref<1x4x128xf32, #tpu.memory_space<vmem>>, vector<1x1x128xf32>,
    %33 = vector.extract_strided_slice %17 {offsets = [32, 0], sizes = [32, 128], strides = [1, 1]} : vector<128x128xf32> to vector<32x128xf32>
    %cst_21 = arith.constant dense<0.000000e+00> : vector<128xf32>
    %34 = vector.multi_reduction <add>, %33, %cst_21 [0] : vector<32x128xf32> to vector<128xf32>
    %35 = vector.shape_cast %34 : vector<128xf32> to vector<1x128xf32>
    %36 = vector.extract_strided_slice %18 {offsets = [1, 0], sizes = [1, 1], strides = [1, 1]} : vector<4x1xf32> to vector<1x1xf32>
    %37 = vector.broadcast %36 : vector<1x1xf32> to vector<1x128xf32>
    %38 = arith.addf %35, %37 : vector<1x128xf32>
    %39 = arith.negf %38 : vector<1x128xf32>
    %40 = math.exp %39 : vector<1x128xf32>
    %cst_22 = arith.constant 1.000000e+00 : f32
    %41 = vector.broadcast %cst_22 : f32 to vector<1x128xf32>
    %42 = arith.addf %41, %40 : vector<1x128xf32>
    %43 = arith.divf %41, %42 : vector<1x128xf32>
    %c0_23 = arith.constant 0 : index
    %c1 = arith.constant 1 : index
    %c0_24 = arith.constant 0 : index
    %44 = vector.load %arg8[%c0_23, %c1, %c0_24] : memref<1x4x128xf32, #tpu.memory_space<vmem>>, vector<1x1x128xf32>
    %45 = vector.shape_cast %44 : vector<1x1x128xf32> to vector<1x128xf32>
    %46 = vector.shape_cast %43 : vector<1x128xf32> to vector<1x1x128xf32>
    tpu.vector_store %arg8[%c0_23, %c1, %c0_24], %46 {strides = array<i32>} : memref<1x4x128xf32, #tpu.memory_space<vmem>>, vector<1x1x128xf32>,
    %47 = vector.extract_strided_slice %17 {offsets = [64, 0], sizes = [32, 128], strides = [1, 1]} : vector<128x128xf32> to vector<32x128xf32>
    %cst_25 = arith.constant dense<0.000000e+00> : vector<128xf32>
    %48 = vector.multi_reduction <add>, %47, %cst_25 [0] : vector<32x128xf32> to vector<128xf32>
    %49 = vector.shape_cast %48 : vector<128xf32> to vector<1x128xf32>
    %50 = vector.extract_strided_slice %18 {offsets = [2, 0], sizes = [1, 1], strides = [1, 1]} : vector<4x1xf32> to vector<1x1xf32>
    %51 = vector.broadcast %50 : vector<1x1xf32> to vector<1x128xf32>
    %52 = arith.addf %49, %51 : vector<1x128xf32>
    %53 = arith.negf %52 : vector<1x128xf32>
    %54 = math.exp %53 : vector<1x128xf32>
    %cst_26 = arith.constant 1.000000e+00 : f32
    %55 = vector.broadcast %cst_26 : f32 to vector<1x128xf32>
    %56 = arith.addf %55, %54 : vector<1x128xf32>
    %57 = arith.divf %55, %56 : vector<1x128xf32>
    %c0_27 = arith.constant 0 : index
    %c2 = arith.constant 2 : index
    %c0_28 = arith.constant 0 : index
    %58 = vector.load %arg8[%c0_27, %c2, %c0_28] : memref<1x4x128xf32, #tpu.memory_space<vmem>>, vector<1x1x128xf32>
    %59 = vector.shape_cast %58 : vector<1x1x128xf32> to vector<1x128xf32>
    %60 = vector.shape_cast %57 : vector<1x128xf32> to vector<1x1x128xf32>
    tpu.vector_store %arg8[%c0_27, %c2, %c0_28], %60 {strides = array<i32>} : memref<1x4x128xf32, #tpu.memory_space<vmem>>, vector<1x1x128xf32>,
    %61 = vector.extract_strided_slice %17 {offsets = [96, 0], sizes = [32, 128], strides = [1, 1]} : vector<128x128xf32> to vector<32x128xf32>
    %cst_29 = arith.constant dense<0.000000e+00> : vector<128xf32>
    %62 = vector.multi_reduction <add>, %61, %cst_29 [0] : vector<32x128xf32> to vector<128xf32>
    %63 = vector.shape_cast %62 : vector<128xf32> to vector<1x128xf32>
    %64 = vector.extract_strided_slice %18 {offsets = [3, 0], sizes = [1, 1], strides = [1, 1]} : vector<4x1xf32> to vector<1x1xf32>
    %65 = vector.broadcast %64 : vector<1x1xf32> to vector<1x128xf32>
    %66 = arith.addf %63, %65 : vector<1x128xf32>
    %67 = arith.negf %66 : vector<1x128xf32>
    %68 = math.exp %67 : vector<1x128xf32>
    %cst_30 = arith.constant 1.000000e+00 : f32
    %69 = vector.broadcast %cst_30 : f32 to vector<1x128xf32>
    %70 = arith.addf %69, %68 : vector<1x128xf32>
    %71 = arith.divf %69, %70 : vector<1x128xf32>
    %c0_31 = arith.constant 0 : index
    %c3 = arith.constant 3 : index
    %c0_32 = arith.constant 0 : index
    %72 = vector.load %arg8[%c0_31, %c3, %c0_32] : memref<1x4x128xf32, #tpu.memory_space<vmem>>, vector<1x1x128xf32>
    %73 = vector.shape_cast %72 : vector<1x1x128xf32> to vector<1x128xf32>
    %74 = vector.shape_cast %71 : vector<1x128xf32> to vector<1x1x128xf32>
    tpu.vector_store %arg8[%c0_31, %c3, %c0_32], %74 {strides = array<i32>} : memref<1x4x128xf32, #tpu.memory_space<vmem>>, vector<1x1x128xf32>,
    return
  }
  func.func @transform_0(%arg0: i32) -> (i32, i32) {
    %c0_i32 = arith.constant 0 : i32
    %c0_i32_0 = arith.constant 0 : i32
    return %arg0, %c0_i32 : i32, i32
  }
  func.func @transform_1(%arg0: i32) -> (i32, i32) {
    %c0_i32 = arith.constant 0 : i32
    %c0_i32_0 = arith.constant 0 : i32
    %c0_i32_1 = arith.constant 0 : i32
    return %c0_i32, %c0_i32_0 : i32, i32
  }
  func.func @transform_2(%arg0: i32) -> (i32, i32) {
    %c0_i32 = arith.constant 0 : i32
    %c0_i32_0 = arith.constant 0 : i32
    %c0_i32_1 = arith.constant 0 : i32
    return %c0_i32, %c0_i32_0 : i32, i32
  }
  func.func @transform_3(%arg0: i32) -> (i32, i32) {
    %c0_i32 = arith.constant 0 : i32
    %c0_i32_0 = arith.constant 0 : i32
    %c0_i32_1 = arith.constant 0 : i32
    return %c0_i32, %c0_i32_0 : i32, i32
  }
  func.func @transform_4(%arg0: i32) -> (i32, i32) {
    %c0_i32 = arith.constant 0 : i32
    %c0_i32_0 = arith.constant 0 : i32
    %c0_i32_1 = arith.constant 0 : i32
    return %c0_i32, %c0_i32_0 : i32, i32
  }
  func.func @transform_5(%arg0: i32) -> (i32, i32) {
    %c0_i32 = arith.constant 0 : i32
    %c0_i32_0 = arith.constant 0 : i32
    %c0_i32_1 = arith.constant 0 : i32
    return %c0_i32, %c0_i32_0 : i32, i32
  }
  func.func @transform_6(%arg0: i32) -> (i32, i32) {
    %c0_i32 = arith.constant 0 : i32
    %c0_i32_0 = arith.constant 0 : i32
    %c0_i32_1 = arith.constant 0 : i32
    return %c0_i32, %c0_i32_0 : i32, i32
  }
  func.func @transform_7(%arg0: i32) -> (i32, i32, i32) {
    %c0_i32 = arith.constant 0 : i32
    %c0_i32_0 = arith.constant 0 : i32
    %c0_i32_1 = arith.constant 0 : i32
    return %arg0, %c0_i32, %c0_i32_0 : i32, i32, i32
  }
}

</mosaic_0001>

<bundles_post_ra>
// kernel: binary_simple_nn.1
= control target key start
LH: loop header
LB: loop body
LE: loop exit
PB: predicated region body
PF: predicated region fallthrough
CT: control target
= control target key end

     0   :  { %v1297_v3 = vmov 0   ;;  %s1911_s0 = inlined_call_operand.vmem [shape: f32[128,128], index: 0, kind: input, shape index: {}]   ;;  %s1912_s2 = inlined_call_operand.vmem [shape: f32[256,1], index: 2, kind: input, shape index: {}]   ;;  %s1913_s1 = inlined_call_operand.vmem [shape: f32[256,128], index: 1, kind: input, shape index: {}]   ;;  %s1914_s4 = inlined_call_operand.vmem [shape: f32[128,1], index: 4, kind: input, shape index: {}]   ;;  %s1915_s5 = inlined_call_operand.vmem [shape: f32[128,1], index: 5, kind: input, shape index: {}]   ;;  %s1916_s6 = inlined_call_operand.vmem [shape: f32[4,1], index: 6, kind: input, shape index: {}]   ;;  %s1917_s3 = inlined_call_operand.vmem [shape: f32[128,256], index: 3, kind: input, shape index: {}]   ;;  %s1918_s7 = inlined_call_operand.vmem [shape: f32[1,4,128], index: 7, kind: output, shape index: {}]  }
   0x1   :  { %v58_v0 = vld [vmem:[%s1911_s0] sm:$0xff]  ;;  %v59_v1 = vld [vmem:[%s1911_s0 + $0x8] sm:$0xff]  ;;  %v60_v2 = vld [vmem:[%s1911_s0 + $0x10] sm:$0xff]  ;;  %1279 = vset.pattern.permute.xlu0 %v1297_v3  ;;  %1280 = vset.pattern.permute.xlu1 %v1297_v3 }
   0x2   :  { %v1214_v4 = vpack.c.bf16 %v59_v1, %v58_v0  ;;  %v61_v5 = vld [vmem:[%s1911_s0 + $0x18] sm:$0xff]  ;;  %v90_v7 = vld [vmem:[%s1912_s2 + $0x80] sm:$0xff]  ;;  %v91_v9 = vld [vmem:[%s1912_s2 + $0x88] sm:$0xff] }
   0x3   :  { %v1218_v6 = vpack.c.bf16 %v61_v5, %v60_v2  ;;  %188 = vperm.xlu0 %1279, %v90_v7   ;;  %v74_v8 = vld [vmem:[%s1912_s2] sm:$0xff]  ;;  %v75_v10 = vld [vmem:[%s1912_s2 + $0x8] sm:$0xff]  ;;  %v92_v13 = vld [vmem:[%s1912_s2 + $0x90] sm:$0xff] }
   0x4   :  { %1215 = vmatprep.subr.bf16.mxu0 %v1214_v4  ;;  %108 = vperm.xlu1 %1280, %v74_v8   ;;  %v62_v11 = vld [vmem:[%s1911_s0 + $0x20] sm:$0xff]  ;;  %v63_v12 = vld [vmem:[%s1911_s0 + $0x28] sm:$0xff]  ;;  %v93_v15 = vld [vmem:[%s1912_s2 + $0x98] sm:$0xff] }
   0x5   :  { %1217 = vmatpush3.bf16.xpose.msra.mxu0 %v1214_v4  ;;  %v1222_v14 = vpack.c.bf16 %v63_v12, %v62_v11  ;;  %v76_v16 = vld [vmem:[%s1912_s2 + $0x10] sm:$0xff]  ;;  %v26_v17 = vld [vmem:[%s1913_s1] sm:$0xff]  ;;  %v77_v18 = vld [vmem:[%s1912_s2 + $0x18] sm:$0xff] }
   0x6   :  { %1219 = vmatprep.subr.bf16.mxu0 %v1218_v6  ;;  %1166 = vmatprep.mubr.f32.mxu0 %v26_v17  ;;  %v64_v19 = vld [vmem:[%s1911_s0 + $0x30] sm:$0xff]  ;;  %v65_v20 = vld [vmem:[%s1911_s0 + $0x38] sm:$0xff]  ;;  %v94_v21 = vld [vmem:[%s1912_s2 + $0xa0] sm:$0xff] }
   0x7   :  { %193 = vperm.xlu0 %1279, %v91_v9   ;;  %v1226_v22 = vpack.c.bf16 %v65_v20, %v64_v19  ;;  %v95_v23 = vld [vmem:[%s1912_s2 + $0xa8] sm:$0xff]  ;;  %v78_v24 = vld [vmem:[%s1912_s2 + $0x20] sm:$0xff]  ;;  %v96_v28 = vld [vmem:[%s1912_s2 + $0xb0] sm:$0xff] }
   0x8   :  { %113 = vperm.xlu1 %1280, %v75_v10   ;;  %v79_v25 = vld [vmem:[%s1912_s2 + $0x28] sm:$0xff]  ;;  %v66_v26 = vld [vmem:[%s1911_s0 + $0x40] sm:$0xff]  ;;  %v97_v30 = vld [vmem:[%s1912_s2 + $0xb8] sm:$0xff] }
   0x9   :  { %v67_v27 = vld [vmem:[%s1911_s0 + $0x48] sm:$0xff]  ;;  %v80_v31 = vld [vmem:[%s1912_s2 + $0x30] sm:$0xff]  ;;  %v81_v32 = vld [vmem:[%s1912_s2 + $0x38] sm:$0xff] }
   0xa   :  { %v1230_v29 = vpack.c.bf16 %v67_v27, %v66_v26  ;;  %v68_v33 = vld [vmem:[%s1911_s0 + $0x50] sm:$0xff]  ;;  %v69_v34 = vld [vmem:[%s1911_s0 + $0x58] sm:$0xff]  ;;  %v98_v35 = vld [vmem:[%s1912_s2 + $0xc0] sm:$0xff] }
   0xb   :  { %198 = vperm.xlu0 %1279, %v92_v13   ;;  %v1234_v36 = vpack.c.bf16 %v69_v34, %v68_v33  ;;  %v99_v37 = vld [vmem:[%s1912_s2 + $0xc8] sm:$0xff]  ;;  %v82_v38 = vld [vmem:[%s1912_s2 + $0x40] sm:$0xff]  ;;  %v100_v42 = vld [vmem:[%s1912_s2 + $0xd0] sm:$0xff] }
   0xc   :  { %203 = vperm.xlu1 %1280, %v93_v15   ;;  %v83_v39 = vld [vmem:[%s1912_s2 + $0x48] sm:$0xff]  ;;  %v70_v40 = vld [vmem:[%s1911_s0 + $0x60] sm:$0xff]  ;;  %v101_v44 = vld [vmem:[%s1912_s2 + $0xd8] sm:$0xff] }
   0xd   :  { %1221 = vmatpush3.bf16.xpose.msra.mxu0 %v1218_v6  ;;  %v71_v41 = vld [vmem:[%s1911_s0 + $0x68] sm:$0xff]  ;;  %v84_v45 = vld [vmem:[%s1912_s2 + $0x50] sm:$0xff]  ;;  %v85_v46 = vld [vmem:[%s1912_s2 + $0x58] sm:$0xff] }
   0xe   :  { %1223 = vmatprep.subr.bf16.mxu0 %v1222_v14  ;;  %v1238_v43 = vpack.c.bf16 %v71_v41, %v70_v40  ;;  %v72_v47 = vld [vmem:[%s1911_s0 + $0x70] sm:$0xff]  ;;  %v73_v48 = vld [vmem:[%s1911_s0 + $0x78] sm:$0xff]  ;;  %v102_v49 = vld [vmem:[%s1912_s2 + $0xe0] sm:$0xff] }
   0xf   :  { %118 = vperm.xlu0 %1279, %v76_v16   ;;  %v1242_v50 = vpack.c.bf16 %v73_v48, %v72_v47  ;;  %v103_v51 = vld [vmem:[%s1912_s2 + $0xe8] sm:$0xff]  ;;  %v86_v52 = vld [vmem:[%s1912_s2 + $0x60] sm:$0xff]  ;;  %v104_v54 = vld [vmem:[%s1912_s2 + $0xf0] sm:$0xff] }
  0x10   :  { %123 = vperm.xlu1 %1280, %v77_v18   ;;  %v87_v53 = vld [vmem:[%s1912_s2 + $0x68] sm:$0xff]  ;;  %v105_v55 = vld [vmem:[%s1912_s2 + $0xf8] sm:$0xff]  ;;  %v88_v56 = vld [vmem:[%s1912_s2 + $0x70] sm:$0xff] }
  0x11   :  { %v89_v57 = vld [vmem:[%s1912_s2 + $0x78] sm:$0xff]  ;;  %v27_v58 = vld [vmem:[%s1913_s1 + $0x8] sm:$0xff]  ;;  %v555_v59 = vld [vmem:[%s1914_s4] sm:$0xff] }
  0x12   :  { %v28_v60 = vld [vmem:[%s1913_s1 + $0x10] sm:$0xff]  ;;  %v556_v61 = vld [vmem:[%s1914_s4 + $0x8] sm:$0xff]  ;;  %v29_v62 = vld [vmem:[%s1913_s1 + $0x18] sm:$0xff] }
  0x13   :  { %208 = vperm.xlu0 %1279, %v94_v21   ;;  %v557_v63 = vld [vmem:[%s1914_s4 + $0x10] sm:$0xff]  ;;  %v30_v0 = vld [vmem:[%s1913_s1 + $0x20] sm:$0xff]  ;;  %v558_v1 = vld [vmem:[%s1914_s4 + $0x18] sm:$0xff] }
  0x14   :  { %213 = vperm.xlu1 %1280, %v95_v23   ;;  %v31_v2 = vld [vmem:[%s1913_s1 + $0x28] sm:$0xff]  ;;  %v559_v3 = vld [vmem:[%s1914_s4 + $0x20] sm:$0xff]  ;;  %v32_v4 = vld [vmem:[%s1913_s1 + $0x30] sm:$0xff] }
  0x15   :  { %1225 = vmatpush3.bf16.xpose.msra.mxu0 %v1222_v14  ;;  %v560_v5 = vld [vmem:[%s1914_s4 + $0x28] sm:$0xff]  ;;  %v33_v6 = vld [vmem:[%s1913_s1 + $0x38] sm:$0xff]  ;;  %v563_v7 = vld [vmem:[%s1914_s4 + $0x40] sm:$0xff] }
  0x16   :  { %1227 = vmatprep.subr.bf16.mxu0 %v1226_v22  ;;  %v34_v8 = vld [vmem:[%s1913_s1 + $0x40] sm:$0xff]  ;;  %v564_v9 = vld [vmem:[%s1914_s4 + $0x48] sm:$0xff]  ;;  %v36_v12 = vld [vmem:[%s1913_s1 + $0x50] sm:$0xff] }
  0x17   :  { %128 = vperm.xlu0 %1279, %v78_v24   ;;  %v35_v10 = vld [vmem:[%s1913_s1 + $0x48] sm:$0xff]  ;;  %v567_v11 = vld [vmem:[%s1914_s4 + $0x60] sm:$0xff]  ;;  %v37_v14 = vld [vmem:[%s1913_s1 + $0x58] sm:$0xff] }
  0x18   :  { %133 = vperm.xlu1 %1280, %v79_v25   ;;  %v568_v13 = vld [vmem:[%s1914_s4 + $0x68] sm:$0xff]  ;;  %v561_v15 = vld [vmem:[%s1914_s4 + $0x30] sm:$0xff]  ;;  %v38_v16 = vld [vmem:[%s1913_s1 + $0x60] sm:$0xff] }
  0x19   :  { %v565_v17 = vld [vmem:[%s1914_s4 + $0x50] sm:$0xff]  ;;  %v39_v18 = vld [vmem:[%s1913_s1 + $0x68] sm:$0xff]  ;;  %v562_v21 = vld [vmem:[%s1914_s4 + $0x38] sm:$0xff] }
  0x1a   :  { %v569_v19 = vld [vmem:[%s1914_s4 + $0x70] sm:$0xff]  ;;  %v566_v23 = vld [vmem:[%s1914_s4 + $0x58] sm:$0xff]  ;;  %v42_v24 = vld [vmem:[%s1913_s1 + $0x80] sm:$0xff] }
  0x1b   :  { %218 = vperm.xlu0 %1279, %v96_v28   ;;  %v40_v20 = vld [vmem:[%s1913_s1 + $0x70] sm:$0xff]  ;;  %v570_v25 = vld [vmem:[%s1914_s4 + $0x78] sm:$0xff]  ;;  %v43_v26 = vld [vmem:[%s1913_s1 + $0x88] sm:$0xff] }
  0x1c   :  { %223 = vperm.xlu1 %1280, %v97_v30   ;;  %v812_v27 = vld [vmem:[%s1915_s5] sm:$0xff]  ;;  %v44_v28 = vld [vmem:[%s1913_s1 + $0x90] sm:$0xff]  ;;  %v45_v30 = vld [vmem:[%s1913_s1 + $0x98] sm:$0xff] }
  0x1d   :  { %1229 = vmatpush3.bf16.xpose.msra.mxu0 %v1226_v22  ;;  %v41_v22 = vld [vmem:[%s1913_s1 + $0x78] sm:$0xff]  ;;  %v817_v33 = vld [vmem:[%s1915_s5 + $0x28] sm:$0xff]  ;;  %v50_v40 = vld [vmem:[%s1913_s1 + $0xc0] sm:$0xff] }
  0x1e   :  { %1231 = vmatprep.subr.bf16.mxu0 %v1230_v29  ;;  %v47_v34 = vld [vmem:[%s1913_s1 + $0xa8] sm:$0xff]  ;;  %v822_v47 = vld [vmem:[%s1915_s5 + $0x50] sm:$0xff]  ;;  %v54_v48 = vld [vmem:[%s1913_s1 + $0xe0] sm:$0xff] }
  0x1f   :  { %138 = vperm.xlu0 %1279, %v80_v31   ;;  %v816_v31 = vld [vmem:[%s1915_s5 + $0x20] sm:$0xff]  ;;  %v825_v41 = vld [vmem:[%s1915_s5 + $0x68] sm:$0xff] }
  0x20   :  { %143 = vperm.xlu1 %1280, %v81_v32   ;;  %v46_v32 = vld [vmem:[%s1913_s1 + $0xa0] sm:$0xff] }
  0x23   :  { %228 = vperm.xlu0 %1279, %v98_v35   ;;  %v820_v35 = vld [vmem:[%s1915_s5 + $0x40] sm:$0xff] }
  0x24   :  { %233 = vperm.xlu1 %1280, %v99_v37   ;;  %v821_v37 = vld [vmem:[%s1915_s5 + $0x48] sm:$0xff] }
  0x25   :  { %1233 = vmatpush3.bf16.xpose.msra.mxu0 %v1230_v29  ;;  %v813_v29 = vld [vmem:[%s1915_s5 + $0x8] sm:$0xff] }
  0x26   :  { %1235 = vmatprep.subr.bf16.mxu0 %v1234_v36 }
  0x27   :  { %148 = vperm.xlu0 %1279, %v82_v38   ;;  %v49_v38 = vld [vmem:[%s1913_s1 + $0xb8] sm:$0xff] }
  0x28   :  { %153 = vperm.xlu1 %1280, %v83_v39   ;;  %v824_v39 = vld [vmem:[%s1915_s5 + $0x60] sm:$0xff] }
  0x2b   :  { %238 = vperm.xlu0 %1279, %v100_v42   ;;  %v51_v42 = vld [vmem:[%s1913_s1 + $0xc8] sm:$0xff] }
  0x2c   :  { %243 = vperm.xlu1 %1280, %v101_v44   ;;  %v52_v44 = vld [vmem:[%s1913_s1 + $0xd0] sm:$0xff] }
  0x2d   :  { %1237 = vmatpush3.bf16.xpose.msra.mxu0 %v1234_v36  ;;  %v48_v36 = vld [vmem:[%s1913_s1 + $0xb0] sm:$0xff] }
  0x2e   :  { %1239 = vmatprep.subr.bf16.mxu0 %v1238_v43 }
  0x2f   :  { %158 = vperm.xlu0 %1279, %v84_v45   ;;  %v818_v45 = vld [vmem:[%s1915_s5 + $0x30] sm:$0xff] }
  0x30   :  { %163 = vperm.xlu1 %1280, %v85_v46   ;;  %v53_v46 = vld [vmem:[%s1913_s1 + $0xd8] sm:$0xff] }
  0x33   :  { %248 = vperm.xlu0 %1279, %v102_v49   ;;  %v826_v49 = vld [vmem:[%s1915_s5 + $0x70] sm:$0xff] }
  0x34   :  { %253 = vperm.xlu1 %1280, %v103_v51   ;;  %v815_v51 = vld [vmem:[%s1915_s5 + $0x18] sm:$0xff] }
  0x35   :  { %1241 = vmatpush3.bf16.xpose.msra.mxu0 %v1238_v43  ;;  %v814_v43 = vld [vmem:[%s1915_s5 + $0x10] sm:$0xff] }
  0x36   :  { %1243 = vmatprep.subr.bf16.mxu0 %v1242_v50 }
  0x37   :  { %168 = vperm.xlu0 %1279, %v86_v52   ;;  %v56_v52 = vld [vmem:[%s1913_s1 + $0xf0] sm:$0xff] }
  0x38   :  { %173 = vperm.xlu1 %1280, %v87_v53   ;;  %v819_v53 = vld [vmem:[%s1915_s5 + $0x38] sm:$0xff] }
  0x3b   :  { %258 = vperm.xlu0 %1279, %v104_v54   ;;  %v57_v54 = vld [vmem:[%s1913_s1 + $0xf8] sm:$0xff] }
  0x3c   :  { %263 = vperm.xlu1 %1280, %v105_v55   ;;  %v823_v55 = vld [vmem:[%s1915_s5 + $0x58] sm:$0xff] }
  0x3d   :  { %1245 = vmatpush3.bf16.xpose.msra.mxu0 %v1242_v50  ;;  %v55_v50 = vld [vmem:[%s1913_s1 + $0xe8] sm:$0xff] }
  0x3f   :  { %178 = vperm.xlu0 %1279, %v88_v56   ;;  %v827_v56 = vld [vmem:[%s1915_s5 + $0x78] sm:$0xff] }
  0x40   :  { %183 = vperm.xlu1 %1280, %v89_v57   ;;  %v924_v57 = vld [vmem:[%s1916_s6] sm:$0xf] }
  0x43   :  { %573 = vperm.xlu0 %1279, %v555_v59  }
  0x44   :  { %1167 = vmatmul.mubr.f32.vlgmr.msra.gmra.mrb[0].mxu0 %v27_v58  ;;  %578 = vperm.xlu1 %1280, %v556_v61  }
  0x45   :  { %1169 = vmatprep.mubr.f32.mxu0 %v28_v60  ;;  %v524_v60 = vld [vmem:[%s1917_s3 + $0x8] sm:$0xff] }
  0x46   :  { %715 = vmatprep.mubr.f32.mxu1 %v524_v60 }
  0x47   :  { %583 = vperm.xlu0 %1279, %v557_v63  }
  0x48   :  { %1170 = vmatmul.mubr.f32.gmra.mrb[2].mxu0 %v29_v62  ;;  %588 = vperm.xlu1 %1280, %v558_v1  }
  0x49   :  { %1172 = vmatprep.mubr.f32.mxu0 %v30_v0 }
  0x4b   :  { %593 = vperm.xlu0 %1279, %v559_v3  }
  0x4c   :  { %1173 = vmatmul.mubr.f32.gmra.mrb[4].mxu0 %v31_v2  ;;  %598 = vperm.xlu1 %1280, %v560_v5  }
  0x4d   :  { %1175 = vmatprep.mubr.f32.mxu0 %v32_v4 }
  0x4f   :  { %613 = vperm.xlu0 %1279, %v563_v7  }
  0x50   :  { %1176 = vmatmul.mubr.f32.gmra.mrb[6].mxu0 %v33_v6  ;;  %618 = vperm.xlu1 %1280, %v564_v9  }
  0x51   :  { %1178 = vmatprep.mubr.f32.mxu0 %v34_v8 }
  0x53   :  { %633 = vperm.xlu0 %1279, %v567_v11  }
  0x54   :  { %1179 = vmatmul.mubr.f32.gmra.mrb[8].mxu0 %v35_v10  ;;  %638 = vperm.xlu1 %1280, %v568_v13  }
  0x55   :  { %1181 = vmatprep.mubr.f32.mxu0 %v36_v12 }
  0x57   :  { %603 = vperm.xlu0 %1279, %v561_v15  }
  0x58   :  { %1182 = vmatmul.mubr.f32.gmra.mrb[10].mxu0 %v37_v14  ;;  %623 = vperm.xlu1 %1280, %v565_v17  }
  0x59   :  { %1184 = vmatprep.mubr.f32.mxu0 %v38_v16 }
  0x5b   :  { %643 = vperm.xlu0 %1279, %v569_v19  }
  0x5c   :  { %1185 = vmatmul.mubr.f32.gmra.mrb[12].mxu0 %v39_v18  ;;  %608 = vperm.xlu1 %1280, %v562_v21  }
  0x5d   :  { %1187 = vmatprep.mubr.f32.mxu0 %v40_v20 }
  0x5f   :  { %628 = vperm.xlu0 %1279, %v566_v23  }
  0x60   :  { %1188 = vmatmul.mubr.f32.gmra.mrb[14].mxu0 %v41_v22  ;;  %648 = vperm.xlu1 %1280, %v570_v25  }
  0x61   :  { %1190 = vmatprep.mubr.f32.mxu0 %v42_v24 }
  0x63   :  { %830 = vperm.xlu0 %1279, %v812_v27  }
  0x64   :  { %1191 = vmatmul.mubr.f32.gmra.mrb[16].mxu0 %v43_v26  ;;  %835 = vperm.xlu1 %1280, %v813_v29  }
  0x65   :  { %1193 = vmatprep.mubr.f32.mxu0 %v44_v28 }
  0x67   :  { %850 = vperm.xlu0 %1279, %v816_v31  }
  0x68   :  { %1194 = vmatmul.mubr.f32.gmra.mrb[18].mxu0 %v45_v30  ;;  %855 = vperm.xlu1 %1280, %v817_v33  }
  0x69   :  { %1196 = vmatprep.mubr.f32.mxu0 %v46_v32 }
  0x6b   :  { %870 = vperm.xlu0 %1279, %v820_v35  }
  0x6c   :  { %1197 = vmatmul.mubr.f32.gmra.mrb[20].mxu0 %v47_v34  ;;  %875 = vperm.xlu1 %1280, %v821_v37  }
  0x6d   :  { %1199 = vmatprep.mubr.f32.mxu0 %v48_v36 }
  0x6f   :  { %890 = vperm.xlu0 %1279, %v824_v39  }
  0x70   :  { %1200 = vmatmul.mubr.f32.gmra.mrb[22].mxu0 %v49_v38  ;;  %895 = vperm.xlu1 %1280, %v825_v41  }
  0x71   :  { %1202 = vmatprep.mubr.f32.mxu0 %v50_v40 }
  0x73   :  { %840 = vperm.xlu0 %1279, %v814_v43  }
  0x74   :  { %1203 = vmatmul.mubr.f32.gmra.mrb[24].mxu0 %v51_v42  ;;  %860 = vperm.xlu1 %1280, %v818_v45  }
  0x75   :  { %1205 = vmatprep.mubr.f32.mxu0 %v52_v44 }
  0x77   :  { %880 = vperm.xlu0 %1279, %v822_v47  }
  0x78   :  { %1206 = vmatmul.mubr.f32.gmra.mrb[26].mxu0 %v53_v46  ;;  %900 = vperm.xlu1 %1280, %v826_v49  }
  0x79   :  { %1208 = vmatprep.mubr.f32.mxu0 %v54_v48 }
  0x7b   :  { %845 = vperm.xlu0 %1279, %v815_v51  }
  0x7c   :  { %1209 = vmatmul.mubr.f32.gmra.mrb[28].mxu0 %v55_v50  ;;  %865 = vperm.xlu1 %1280, %v819_v53  }
  0x7d   :  { %1211 = vmatprep.mubr.f32.mxu0 %v56_v52 }
  0x7f   :  { %885 = vperm.xlu0 %1279, %v823_v55  }
  0x80   :  { %1212 = vmatmul.mubr.f32.gmra.mrb[30].mxu0 %v57_v54  ;;  %905 = vperm.xlu1 %1280, %v827_v56  }
  0x82   :  { %v1677_v59 = vpop.permute.xlu0 %188 }
  0x83   :  { %936 = vperm.xlu0 %1279, %v924_v57   ;;  %v109_v58 = vpop.permute.xlu1 %108 }
  0x86   :  { %v1682_v62 = vpop.permute.xlu0 %193 }
  0x87   :  { %v114_v61 = vpop.permute.xlu1 %113 }
  0x8a   :  { %v1686_v0 = vpop.permute.xlu0 %198 }
  0x8b   :  { %v1684_v63 = vpop.permute.xlu1 %203 }
  0x8e   :  { %v119_v2 = vpop.permute.xlu0 %118 }
  0x8f   :  { %v124_v1 = vpop.permute.xlu1 %123 }
  0x92   :  { %v1690_v4 = vpop.permute.xlu0 %208 }
  0x93   :  { %v1688_v3 = vpop.permute.xlu1 %213 }
  0x96   :  { %v129_v6 = vpop.permute.xlu0 %128 }
  0x97   :  { %v134_v5 = vpop.permute.xlu1 %133 }
  0x9a   :  { %v1694_v8 = vpop.permute.xlu0 %218 }
  0x9b   :  { %v1692_v7 = vpop.permute.xlu1 %223 }
  0x9e   :  { %v139_v10 = vpop.permute.xlu0 %138 }
  0x9f   :  { %v144_v9 = vpop.permute.xlu1 %143 }
  0xa2   :  { %v1698_v12 = vpop.permute.xlu0 %228 }
  0xa3   :  { %v1696_v11 = vpop.permute.xlu1 %233 }
  0xa6   :  { %v149_v14 = vpop.permute.xlu0 %148 }
  0xa7   :  { %v154_v13 = vpop.permute.xlu1 %153 }
  0xaa   :  { %v1702_v16 = vpop.permute.xlu0 %238 }
  0xab   :  { %v1700_v15 = vpop.permute.xlu1 %243 }
  0xae   :  { %v159_v25 = vpop.permute.xlu0 %158 }
  0xaf   :  { %v164_v22 = vpop.permute.xlu1 %163 }
  0xb2   :  { %v1710_v38 = vpop.permute.xlu0 %248 }
  0xb3   :  { %v1706_v35 = vpop.permute.xlu1 %253 }
  0xb6   :  { %v169_v50 = vpop.permute.xlu0 %168 }
  0xb7   :  { %v174_v47 = vpop.permute.xlu1 %173 }
 0x117   :  { %v1168_v17 = vpop.f32.mrb[0].mxu0 }
 0x118   :  { %v338_v18 = vadd.f32 %v1168_v17, %v114_v61  ;;  %v332_v19 = vpop.f32.mrb[1].mxu0  ;;  %v1716_v61 = vpop.permute.xlu1 %263 }
 0x119   :  { %v333_v20 = vadd.f32 %v332_v19, %v109_v58 }
 0x11a   :  { %v492_v21 = vmax.f32 %v338_v18, 0.0 }
 0x11b   :  { %v491_v23 = vmax.f32 %v333_v20, 0.0  ;;  %v1171_v24 = vpop.f32.mrb[2].mxu0 }
 0x11c   :  { %v348_v26 = vadd.f32 %v1171_v24, %v124_v1  ;;  %v342_v27 = vpop.f32.mrb[3].mxu0  ;;  %v184_v20 = vpop.permute.xlu1 %183 }
 0x11d   :  { %v343_v28 = vadd.f32 %v342_v27, %v119_v2  ;;  %v1704_v29 = vpack.c.bf16 %v492_v21, %v491_v23 }
 0x11e   :  { %v494_v30 = vmax.f32 %v348_v26, 0.0 }
 0x11f   :  { %v493_v31 = vmax.f32 %v343_v28, 0.0  ;;  %v1174_v32 = vpop.f32.mrb[4].mxu0 }
 0x120   :  { %v358_v33 = vadd.f32 %v1174_v32, %v134_v5  ;;  %v352_v34 = vpop.f32.mrb[5].mxu0  ;;  %v1720_v5 = vpop.permute.xlu0 %258 }
 0x121   :  { %v1708_v36 = vpack.c.bf16 %v494_v30, %v493_v31  ;;  %v353_v37 = vadd.f32 %v352_v34, %v129_v6 }
 0x122   :  { %v496_v39 = vmax.f32 %v358_v33, 0.0 }
 0x123   :  { %v495_v40 = vmax.f32 %v353_v37, 0.0  ;;  %v1177_v41 = vpop.f32.mrb[6].mxu0 }
 0x124   :  { %v368_v42 = vadd.f32 %v1177_v41, %v144_v9  ;;  %v362_v43 = vpop.f32.mrb[7].mxu0  ;;  %v179_v23 = vpop.permute.xlu0 %178 }
 0x125   :  { %v1712_v44 = vpack.c.bf16 %v496_v39, %v495_v40  ;;  %v363_v45 = vadd.f32 %v362_v43, %v139_v10 }
 0x126   :  { %v498_v46 = vmax.f32 %v368_v42, 0.0 }
 0x127   :  { %v497_v48 = vmax.f32 %v363_v45, 0.0  ;;  %v1180_v49 = vpop.f32.mrb[8].mxu0 }
 0x128   :  { %v378_v51 = vadd.f32 %v1180_v49, %v154_v13  ;;  %v372_v52 = vpop.f32.mrb[9].mxu0 }
 0x129   :  { %v1714_v53 = vpack.c.bf16 %v498_v46, %v497_v48  ;;  %v373_v54 = vadd.f32 %v372_v52, %v149_v14 }
 0x12a   :  { %v500_v55 = vmax.f32 %v378_v51, 0.0 }
 0x12b   :  { %v499_v56 = vmax.f32 %v373_v54, 0.0  ;;  %v1183_v57 = vpop.f32.mrb[10].mxu0 }
 0x12c   :  { %v388_v58 = vadd.f32 %v1183_v57, %v164_v22  ;;  %v382_v60 = vpop.f32.mrb[11].mxu0 }
 0x12d   :  { %v1718_v1 = vpack.c.bf16 %v500_v55, %v499_v56  ;;  %v383_v2 = vadd.f32 %v382_v60, %v159_v25 }
 0x12e   :  { %v502_v6 = vmax.f32 %v388_v58, 0.0 }
 0x12f   :  { %v501_v9 = vmax.f32 %v383_v2, 0.0  ;;  %v1186_v10 = vpop.f32.mrb[12].mxu0 }
 0x130   :  { %v398_v13 = vadd.f32 %v1186_v10, %v174_v47  ;;  %v392_v17 = vpop.f32.mrb[13].mxu0 }
 0x131   :  { %v1722_v18 = vpack.c.bf16 %v502_v6, %v501_v9  ;;  %v393_v14 = vadd.f32 %v392_v17, %v169_v50 }
 0x132   :  { %v504_v19 = vmax.f32 %v398_v13, 0.0 }
 0x133   :  { %v503_v21 = vmax.f32 %v393_v14, 0.0  ;;  %v1189_v22 = vpop.f32.mrb[14].mxu0 }
 0x134   :  { %v408_v24 = vadd.f32 %v1189_v22, %v184_v20  ;;  %v402_v26 = vpop.f32.mrb[15].mxu0 }
 0x135   :  { %v1724_v27 = vpack.c.bf16 %v504_v19, %v503_v21  ;;  %v403_v25 = vadd.f32 %v402_v26, %v179_v23 }
 0x136   :  { %v506_v28 = vmax.f32 %v408_v24, 0.0 }
 0x137   :  { %v505_v30 = vmax.f32 %v403_v25, 0.0  ;;  %v1192_v31 = vpop.f32.mrb[16].mxu0 }
 0x138   :  { %v418_v32 = vadd.f32 %v1192_v31, %v1682_v62  ;;  %v412_v33 = vpop.f32.mrb[17].mxu0  ;;  %v532_v31 = vld [vmem:[%s1917_s3 + $0x48] sm:$0xff] }
 0x139   :  { %v1727_v34 = vpack.c.bf16 %v506_v28, %v505_v30  ;;  %v413_v37 = vadd.f32 %v412_v33, %v1677_v59  ;;  %v530_v28 = vld [vmem:[%s1917_s3 + $0x38] sm:$0xff]  ;;  %v529_v30 = vld [vmem:[%s1917_s3 + $0x30] sm:$0xff] }
 0x13a   :  { %v508_v39 = vmax.f32 %v418_v32, 0.0  ;;  %v531_v32 = vld [vmem:[%s1917_s3 + $0x40] sm:$0xff]  ;;  %v534_v33 = vld [vmem:[%s1917_s3 + $0x58] sm:$0xff] }
 0x13b   :  { %v507_v40 = vmax.f32 %v413_v37, 0.0  ;;  %v1195_v41 = vpop.f32.mrb[18].mxu0  ;;  %v536_v37 = vld [vmem:[%s1917_s3 + $0x68] sm:$0xff] }
 0x13c   :  { %v428_v42 = vadd.f32 %v1195_v41, %v1684_v63  ;;  %v422_v43 = vpop.f32.mrb[19].mxu0  ;;  %v537_v41 = vld [vmem:[%s1917_s3 + $0x70] sm:$0xff] }
 0x13d   :  { %v423_v45 = vadd.f32 %v422_v43, %v1686_v0  ;;  %v1246_v46 = vpack.c.bf16 %v508_v39, %v507_v40  ;;  %v535_v39 = vld [vmem:[%s1917_s3 + $0x60] sm:$0xff]  ;;  %v538_v40 = vld [vmem:[%s1917_s3 + $0x78] sm:$0xff] }
 0x13e   :  { %v510_v47 = vmax.f32 %v428_v42, 0.0  ;;  %v540_v42 = vld [vmem:[%s1917_s3 + $0x88] sm:$0xff]  ;;  %v539_v43 = vld [vmem:[%s1917_s3 + $0x80] sm:$0xff] }
 0x13f   :  { %v509_v48 = vmax.f32 %v423_v45, 0.0  ;;  %v1198_v49 = vpop.f32.mrb[20].mxu0  ;;  %1247 = vmatprep.subr.bf16.mxu1 %v1246_v46  ;;  %v542_v45 = vld [vmem:[%s1917_s3 + $0x98] sm:$0xff]  ;;  %v541_v46 = vld [vmem:[%s1917_s3 + $0x90] sm:$0xff] }
 0x140   :  { %v438_v62 = vadd.f32 %v1198_v49, %v1688_v3  ;;  %v432_v50 = vpop.f32.mrb[21].mxu0  ;;  %1249 = vmatpush3.bf16.msra.mxu1 %v1704_v29  ;;  %v546_v49 = vld [vmem:[%s1917_s3 + $0xb8] sm:$0xff] }
 0x141   :  { %v1250_v51 = vpack.c.bf16 %v510_v47, %v509_v48  ;;  %v433_v59 = vadd.f32 %v432_v50, %v1690_v4  ;;  %v544_v47 = vld [vmem:[%s1917_s3 + $0xa8] sm:$0xff]  ;;  %v543_v48 = vld [vmem:[%s1917_s3 + $0xa0] sm:$0xff] }
 0x142   :  { %v512_v52 = vmax.f32 %v438_v62, 0.0  ;;  %v545_v62 = vld [vmem:[%s1917_s3 + $0xb0] sm:$0xff]  ;;  %v548_v50 = vld [vmem:[%s1917_s3 + $0xc8] sm:$0xff] }
 0x143   :  { %v511_v54 = vmax.f32 %v433_v59, 0.0  ;;  %v1201_v55 = vpop.f32.mrb[22].mxu0  ;;  %1251 = vmatprep.subr.bf16.mxu1 %v1250_v51  ;;  %v547_v51 = vld [vmem:[%s1917_s3 + $0xc0] sm:$0xff]  ;;  %v550_v59 = vld [vmem:[%s1917_s3 + $0xd8] sm:$0xff] }
 0x144   :  { %v448_v63 = vadd.f32 %v1201_v55, %v1692_v7  ;;  %v442_v0 = vpop.f32.mrb[23].mxu0  ;;  %1253 = vmatpush3.bf16.msra.mxu1 %v1708_v36  ;;  %v551_v55 = vld [vmem:[%s1917_s3 + $0xe0] sm:$0xff] }
 0x145   :  { %v1254_v56 = vpack.c.bf16 %v512_v52, %v511_v54  ;;  %v443_v57 = vadd.f32 %v442_v0, %v1694_v8  ;;  %v549_v52 = vld [vmem:[%s1917_s3 + $0xd0] sm:$0xff]  ;;  %v552_v54 = vld [vmem:[%s1917_s3 + $0xe8] sm:$0xff] }
 0x146   :  { %v514_v58 = vmax.f32 %v448_v63, 0.0  ;;  %v554_v63 = vld [vmem:[%s1917_s3 + $0xf8] sm:$0xff]  ;;  %v553_v0 = vld [vmem:[%s1917_s3 + $0xf0] sm:$0xff] }
 0x147   :  { %v513_v3 = vmax.f32 %v443_v57, 0.0  ;;  %v1204_v60 = vpop.f32.mrb[24].mxu0  ;;  %1255 = vmatprep.subr.bf16.mxu1 %v1254_v56  ;;  %v574_v56 = vpop.permute.xlu0 %573 }
 0x148   :  { %v458_v29 = vadd.f32 %v1204_v60, %v1696_v11  ;;  %v452_v2 = vpop.f32.mrb[25].mxu0  ;;  %1257 = vmatpush3.bf16.msra.mxu1 %v1712_v44 }
 0x149   :  { %v1258_v4 = vpack.c.bf16 %v514_v58, %v513_v3  ;;  %v453_v6 = vadd.f32 %v452_v2, %v1698_v12  ;;  %v579_v3 = vpop.permute.xlu1 %578 }
 0x14a   :  { %v516_v9 = vmax.f32 %v458_v29, 0.0 }
 0x14b   :  { %v515_v7 = vmax.f32 %v453_v6, 0.0  ;;  %v1207_v10 = vpop.f32.mrb[26].mxu0  ;;  %1259 = vmatprep.subr.bf16.mxu1 %v1258_v4  ;;  %v584_v57 = vpop.permute.xlu0 %583 }
 0x14c   :  { %v468_v36 = vadd.f32 %v1207_v10, %v1700_v15  ;;  %v462_v13 = vpop.f32.mrb[27].mxu0  ;;  %1261 = vmatpush3.bf16.msra.mxu1 %v1714_v53 }
 0x14d   :  { %v1262_v8 = vpack.c.bf16 %v516_v9, %v515_v7  ;;  %v463_v17 = vadd.f32 %v462_v13, %v1702_v16  ;;  %v589_v29 = vpop.permute.xlu1 %588 }
 0x14e   :  { %v518_v14 = vmax.f32 %v468_v36, 0.0 }
 0x14f   :  { %v517_v11 = vmax.f32 %v463_v17, 0.0  ;;  %v1210_v19 = vpop.f32.mrb[28].mxu0  ;;  %1263 = vmatprep.subr.bf16.mxu1 %v1262_v8  ;;  %v594_v58 = vpop.permute.xlu0 %593 }
 0x150   :  { %v478_v44 = vadd.f32 %v1210_v19, %v1706_v35  ;;  %v472_v20 = vpop.f32.mrb[29].mxu0  ;;  %1265 = vmatpush3.bf16.msra.mxu1 %v1718_v1 }
 0x151   :  { %v1266_v12 = vpack.c.bf16 %v518_v14, %v517_v11  ;;  %v473_v21 = vadd.f32 %v472_v20, %v1710_v38  ;;  %v523_v38 = vld [vmem:[%s1917_s3] sm:$0xff]  ;;  %v599_v4 = vpop.permute.xlu1 %598 }
 0x152   :  { %v520_v22 = vmax.f32 %v478_v44, 0.0 }
 0x153   :  { %v519_v15 = vmax.f32 %v473_v21, 0.0  ;;  %v1213_v23 = vpop.f32.mrb[30].mxu0  ;;  %1267 = vmatprep.subr.bf16.mxu1 %v1266_v12  ;;  %v1845_v60 = vpop.permute.xlu0 %613 }
 0x154   :  { %v488_v53 = vadd.f32 %v1213_v23, %v1716_v61  ;;  %v482_v24 = vpop.f32.mrb[31].mxu0  ;;  %1269 = vmatpush3.bf16.msra.mxu1 %v1722_v18  ;;  %v526_v61 = vld [vmem:[%s1917_s3 + $0x18] sm:$0xff]  ;;  %v528_v18 = vld [vmem:[%s1917_s3 + $0x28] sm:$0xff] }
 0x155   :  { %v1270_v16 = vpack.c.bf16 %v520_v22, %v519_v15  ;;  %v483_v26 = vadd.f32 %v482_v24, %v1720_v5  ;;  %v525_v5 = vld [vmem:[%s1917_s3 + $0x10] sm:$0xff]  ;;  %v1851_v9 = vpop.permute.xlu1 %618 }
 0x156   :  { %v522_v25 = vmax.f32 %v488_v53, 0.0 }
 0x157   :  { %v521_v35 = vmax.f32 %v483_v26, 0.0  ;;  %1271 = vmatprep.subr.bf16.mxu1 %v1270_v16  ;;  %v1847_v2 = vpop.permute.xlu0 %633 }
 0x158   :  { %1273 = vmatpush3.bf16.msra.mxu1 %v1724_v27  ;;  %v527_v27 = vld [vmem:[%s1917_s3 + $0x20] sm:$0xff] }
 0x159   :  { %v1274_v1 = vpack.c.bf16 %v522_v25, %v521_v35  ;;  %v1855_v10 = vpop.permute.xlu1 %638 }
 0x15b   :  { %1275 = vmatprep.subr.bf16.mxu1 %v1274_v1  ;;  %v1849_v6 = vpop.permute.xlu0 %603 }
 0x15c   :  { %1277 = vmatpush3.bf16.msra.mxu1 %v1727_v34  ;;  %v533_v34 = vld [vmem:[%s1917_s3 + $0x50] sm:$0xff] }
 0x15d   :  { %v1859_v13 = vpop.permute.xlu1 %623 }
 0x15f   :  { %716 = vmatmul.mubr.f32.vlgmr.msra.gmra.mrb[0].mxu1 %v523_v38  ;;  %v1853_v7 = vpop.permute.xlu0 %643 }
 0x160   :  { %720 = vmatprep.mubr.f32.mxu1 %v526_v61 }
 0x161   :  { %v1861_v17 = vpop.permute.xlu1 %608 }
 0x163   :  { %721 = vmatmul.mubr.f32.gmra.mrb[2].mxu1 %v525_v5  ;;  %v1857_v36 = vpop.permute.xlu0 %628 }
 0x164   :  { %725 = vmatprep.mubr.f32.mxu1 %v528_v18 }
 0x165   :  { %v1863_v11 = vpop.permute.xlu1 %648 }
 0x167   :  { %726 = vmatmul.mubr.f32.gmra.mrb[4].mxu1 %v527_v27  ;;  %v831_v8 = vpop.permute.xlu0 %830 }
 0x168   :  { %730 = vmatprep.mubr.f32.mxu1 %v530_v28 }
 0x169   :  { %v836_v44 = vpop.permute.xlu1 %835 }
 0x16b   :  { %731 = vmatmul.mubr.f32.gmra.mrb[6].mxu1 %v529_v30  ;;  %v851_v14 = vpop.permute.xlu0 %850 }
 0x16c   :  { %735 = vmatprep.mubr.f32.mxu1 %v532_v31 }
 0x16d   :  { %v856_v15 = vpop.permute.xlu1 %855 }
 0x16f   :  { %736 = vmatmul.mubr.f32.gmra.mrb[8].mxu1 %v531_v32  ;;  %v1865_v19 = vpop.permute.xlu0 %870 }
 0x170   :  { %740 = vmatprep.mubr.f32.mxu1 %v534_v33 }
 0x171   :  { %v1869_v61 = vpop.permute.xlu1 %875 }
 0x173   :  { %741 = vmatmul.mubr.f32.gmra.mrb[10].mxu1 %v533_v34  ;;  %v1867_v12 = vpop.permute.xlu0 %890 }
 0x174   :  { %745 = vmatprep.mubr.f32.mxu1 %v536_v37 }
 0x177   :  { %746 = vmatmul.mubr.f32.gmra.mrb[12].mxu1 %v535_v39  ;;  %v841_v26 = vpop.permute.xlu0 %840 }
 0x178   :  { %750 = vmatprep.mubr.f32.mxu1 %v538_v40  ;;  %v1873_v40 = vpop.permute.xlu1 %895 }
 0x17b   :  { %751 = vmatmul.mubr.f32.gmra.mrb[14].mxu1 %v537_v41  ;;  %v1871_v32 = vpop.permute.xlu0 %880 }
 0x17c   :  { %755 = vmatprep.mubr.f32.mxu1 %v540_v42 }
 0x17f   :  { %756 = vmatmul.mubr.f32.gmra.mrb[16].mxu1 %v539_v43 }
 0x180   :  { %760 = vmatprep.mubr.f32.mxu1 %v542_v45 }
 0x183   :  { %761 = vmatmul.mubr.f32.gmra.mrb[18].mxu1 %v541_v46 }
 0x184   :  { %765 = vmatprep.mubr.f32.mxu1 %v544_v47 }
 0x187   :  { %766 = vmatmul.mubr.f32.gmra.mrb[20].mxu1 %v543_v48 }
 0x188   :  { %770 = vmatprep.mubr.f32.mxu1 %v546_v49  ;;  %v846_v49 = vpop.permute.xlu0 %845 }
 0x18b   :  { %771 = vmatmul.mubr.f32.gmra.mrb[22].mxu1 %v545_v62 }
 0x18c   :  { %775 = vmatprep.mubr.f32.mxu1 %v548_v50 }
 0x18f   :  { %776 = vmatmul.mubr.f32.gmra.mrb[24].mxu1 %v547_v51 }
 0x190   :  { %780 = vmatprep.mubr.f32.mxu1 %v550_v59 }
 0x193   :  { %781 = vmatmul.mubr.f32.gmra.mrb[26].mxu1 %v549_v52  ;;  %v861_v52 = vpop.permute.xlu1 %860 }
 0x194   :  { %785 = vmatprep.mubr.f32.mxu1 %v552_v54 }
 0x197   :  { %786 = vmatmul.mubr.f32.gmra.mrb[28].mxu1 %v551_v55 }
 0x198   :  { %790 = vmatprep.mubr.f32.mxu1 %v554_v63 }
 0x19b   :  { %791 = vmatmul.mubr.f32.gmra.mrb[30].mxu1 %v553_v0 }
 0x232   :  { %v1086_v20 = vpop.f32.mrb[0].mxu1 }
 0x233   :  { %v1087_v21 = vpop.f32.mrb[1].mxu1 }
 0x234   :  { %v1088_v22 = vadd.f32 %v1087_v21, %v1086_v20  ;;  %v1875_v20 = vpop.permute.xlu1 %900 }
 0x236   :  { %v718_v23 = vadd.f32 %v1088_v22, %v574_v56  ;;  %v1089_v53 = vpop.f32.mrb[2].mxu1 }
 0x237   :  { %v1090_v24 = vpop.f32.mrb[3].mxu1 }
 0x238   :  { %v1091_v16 = vadd.f32 %v1090_v24, %v1089_v53  ;;  %v796_v25 = vmax.f32 %v718_v23, 0.0  ;;  %v886_v24 = vpop.permute.xlu0 %885 }
 0x23a   :  { %v723_v35 = vadd.f32 %v1091_v16, %v579_v3  ;;  %v1092_v1 = vpop.f32.mrb[4].mxu1  ;;  %v908_v27 = vmul.f32 %v831_v8, %v796_v25 }
 0x23b   :  { %v1093_v38 = vpop.f32.mrb[5].mxu1 }
 0x23c   :  { %v797_v5 = vmax.f32 %v723_v35, 0.0  ;;  %v1094_v18 = vadd.f32 %v1093_v38, %v1092_v1 }
 0x23e   :  { %v909_v28 = vmul.f32 %v836_v44, %v797_v5  ;;  %v728_v30 = vadd.f32 %v1094_v18, %v584_v57  ;;  %v1095_v31 = vpop.f32.mrb[6].mxu1 }
 0x23f   :  { %v1096_v33 = vpop.f32.mrb[7].mxu1 }
 0x240   :  { %v925_v34 = vadd.f32 %v909_v28, %v908_v27  ;;  %v798_v37 = vmax.f32 %v728_v30, 0.0  ;;  %v1097_v39 = vadd.f32 %v1096_v33, %v1095_v31  ;;  %v1879_v33 = vpop.permute.xlu0 %936 }
 0x242   :  { %v910_v41 = vmul.f32 %v841_v26, %v798_v37  ;;  %v733_v42 = vadd.f32 %v1097_v39, %v589_v29  ;;  %v1098_v43 = vpop.f32.mrb[8].mxu1 }
 0x243   :  { %v1099_v45 = vpop.f32.mrb[9].mxu1 }
 0x244   :  { %v926_v46 = vadd.f32 %v925_v34, %v910_v41  ;;  %v799_v47 = vmax.f32 %v733_v42, 0.0  ;;  %v1100_v48 = vadd.f32 %v1099_v45, %v1098_v43 }
 0x246   :  { %v911_v62 = vmul.f32 %v846_v49, %v799_v47  ;;  %v738_v50 = vadd.f32 %v1100_v48, %v594_v58  ;;  %v1101_v51 = vpop.f32.mrb[10].mxu1 }
 0x247   :  { %v1102_v59 = vpop.f32.mrb[11].mxu1 }
 0x248   :  { %v927_v54 = vadd.f32 %v926_v46, %v911_v62  ;;  %v1103_v55 = vadd.f32 %v1102_v59, %v1101_v51  ;;  %v800_v0 = vmax.f32 %v738_v50, 0.0 }
 0x24a   :  { %v928_v63 = vrot.slane %v927_v54, 4  ;;  %v743_v56 = vadd.f32 %v1103_v55, %v599_v4  ;;  %v1104_v57 = vpop.f32.mrb[12].mxu1  ;;  %v912_v22 = vmul.f32 %v851_v14, %v800_v0 }
 0x24b   :  { %v1105_v3 = vpop.f32.mrb[13].mxu1 }
 0x24c   :  { %v929_v8 = vadd.f32 %v928_v63, %v927_v54  ;;  %v801_v29 = vmax.f32 %v743_v56, 0.0  ;;  %v1106_v44 = vadd.f32 %v1105_v3, %v1104_v57 }
 0x24e   :  { %v930_v21 = vrot.slane %v929_v8, 2  ;;  %v913_v23 = vmul.f32 %v856_v15, %v801_v29  ;;  %v748_v58 = vadd.f32 %v1106_v44, %v1849_v6  ;;  %v1107_v53 = vpop.f32.mrb[14].mxu1  ;;  %v866_v15 = vpop.permute.xlu1 %865 }
 0x24f   :  { %v1108_v16 = vpop.f32.mrb[15].mxu1 }
 0x250   :  { %v931_v26 = vadd.f32 %v930_v21, %v929_v8  ;;  %v947_v25 = vadd.f32 %v913_v23, %v912_v22  ;;  %v802_v35 = vmax.f32 %v748_v58, 0.0  ;;  %v1109_v1 = vadd.f32 %v1108_v16, %v1107_v53 }
 0x252   :  { %v932_v4 = vrot.slane %v931_v26, 1  ;;  %v914_v38 = vmul.f32 %v861_v52, %v802_v35  ;;  %v753_v5 = vadd.f32 %v1109_v1, %v1861_v17  ;;  %v1110_v18 = vpop.f32.mrb[16].mxu1 }
 0x253   :  { %v1111_v27 = vpop.f32.mrb[17].mxu1 }
 0x254   :  { %v933_v28 = vadd.f32 %v932_v4, %v931_v26  ;;  %v948_v30 = vadd.f32 %v947_v25, %v914_v38  ;;  %v803_v31 = vmax.f32 %v753_v5, 0.0  ;;  %v1112_v14 = vadd.f32 %v1111_v27, %v1110_v18 }
 0x256   :  { %v939_v6 = vadd.f32 %v1879_v33, %v933_v28  ;;  %v915_v34 = vmul.f32 %v866_v15, %v803_v31  ;;  %v758_v37 = vadd.f32 %v1112_v14, %v1845_v60  ;;  %v1113_v39 = vpop.f32.mrb[18].mxu1 }
 0x257   :  { %v1114_v41 = vpop.f32.mrb[19].mxu1 }
 0x258   :  { %v1002_v42 = vmul.f32 -1.442695, %v939_v6  ;;  %v949_v43 = vadd.f32 %v948_v30, %v915_v34  ;;  %v1115_v45 = vadd.f32 %v1114_v41, %v1113_v39  ;;  %v804_v46 = vmax.f32 %v758_v37, 0.0 }
 0x25a   :  { %1281 = vpow2.f32 %v1002_v42  ;;  %v950_v17 = vrot.slane %v949_v43, 4  ;;  %v763_v47 = vadd.f32 %v1115_v45, %v1851_v9  ;;  %v1116_v48 = vpop.f32.mrb[20].mxu1  ;;  %v916_v52 = vmul.f32 %v1865_v19, %v804_v46 }
 0x25b   :  { %v1117_v49 = vpop.f32.mrb[21].mxu1 }
 0x25c   :  { %v951_v62 = vadd.f32 %v950_v17, %v949_v43  ;;  %v805_v50 = vmax.f32 %v763_v47, 0.0  ;;  %v1118_v51 = vadd.f32 %v1117_v49, %v1116_v48  ;;  %v906_v47 = vpop.permute.xlu1 %905 }
 0x25e   :  { %v952_v59 = vrot.slane %v951_v62, 2  ;;  %v917_v60 = vmul.f32 %v1869_v61, %v805_v50  ;;  %v768_v54 = vadd.f32 %v1118_v51, %v1859_v13  ;;  %v1119_v55 = vpop.f32.mrb[22].mxu1 }
 0x25f   :  { %v1120_v63 = vpop.f32.mrb[23].mxu1 }
 0x260   :  { %v953_v0 = vadd.f32 %v952_v59, %v951_v62  ;;  %v964_v56 = vadd.f32 %v917_v60, %v916_v52  ;;  %v806_v57 = vmax.f32 %v768_v54, 0.0  ;;  %v1121_v3 = vadd.f32 %v1120_v63, %v1119_v55 }
 0x262   :  { %v954_v8 = vrot.slane %v953_v0, 1  ;;  %v918_v9 = vmul.f32 %v1871_v32, %v806_v57  ;;  %v773_v29 = vadd.f32 %v1121_v3, %v1857_v36  ;;  %v1122_v44 = vpop.f32.mrb[24].mxu1 }
 0x263   :  { %v1123_v21 = vpop.f32.mrb[25].mxu1 }
 0x264   :  { %v1282_v22 = vpop.eup %1281  ;;  %v955_v23 = vadd.f32 %v954_v8, %v953_v0  ;;  %v965_v19 = vadd.f32 %v964_v56, %v918_v9  ;;  %v807_v58 = vmax.f32 %v773_v29, 0.0  ;;  %v1124_v61 = vadd.f32 %v1123_v21, %v1122_v44 }
 0x265   :  { %v943_v53 = vadd.f32 1.0, %v1282_v22 }
 0x266   :  { %v956_v13 = vadd.f32 %v955_v23, %v1879_v33  ;;  %v919_v16 = vmul.f32 %v886_v24, %v807_v58  ;;  %v778_v26 = vadd.f32 %v1124_v61, %v1847_v2  ;;  %v1125_v25 = vpop.f32.mrb[26].mxu1 }
 0x267   :  { %1283 = vrcp.f32 %v943_v53  ;;  %v1126_v35 = vpop.f32.mrb[27].mxu1 }
 0x268   :  { %v1003_v1 = vmul.f32 -1.442695, %v956_v13  ;;  %v966_v32 = vadd.f32 %v965_v19, %v919_v16  ;;  %v1127_v4 = vadd.f32 %v1126_v35, %v1125_v25  ;;  %v808_v38 = vmax.f32 %v778_v26, 0.0 }
 0x26a   :  { %1285 = vpow2.f32 %v1003_v1  ;;  %v967_v36 = vrot.slane %v966_v32, 4  ;;  %v783_v5 = vadd.f32 %v1127_v4, %v1855_v10  ;;  %v1128_v18 = vpop.f32.mrb[28].mxu1  ;;  %v920_v24 = vmul.f32 %v1867_v12, %v808_v38 }
 0x26b   :  { %v1129_v27 = vpop.f32.mrb[29].mxu1 }
 0x26c   :  { %v968_v28 = vadd.f32 %v967_v36, %v966_v32  ;;  %v809_v30 = vmax.f32 %v783_v5, 0.0  ;;  %v1130_v31 = vadd.f32 %v1129_v27, %v1128_v18 }
 0x26e   :  { %v969_v14 = vrot.slane %v968_v28, 2  ;;  %v921_v2 = vmul.f32 %v1873_v40, %v809_v30  ;;  %v788_v15 = vadd.f32 %v1130_v31, %v1853_v7  ;;  %v1131_v6 = vpop.f32.mrb[30].mxu1 }
 0x26f   :  { %v1132_v34 = vpop.f32.mrb[31].mxu1 }
 0x270   :  { %v970_v37 = vadd.f32 %v969_v14, %v968_v28  ;;  %v981_v39 = vadd.f32 %v921_v2, %v920_v24  ;;  %v810_v41 = vmax.f32 %v788_v15, 0.0  ;;  %v1133_v42 = vadd.f32 %v1132_v34, %v1131_v6 }
 0x271   :  { %v1284_v43 = vpop.eup %1283 }
 0x272   :  { %946 = vst [vmem:[%s1918_s7] sm:$0x1] %v1284_v43  ;;  %v971_v10 = vrot.slane %v970_v37, 1  ;;  %v922_v45 = vmul.f32 %v1875_v20, %v810_v41  ;;  %v793_v12 = vadd.f32 %v1133_v42, %v1863_v11 }
 0x274   :  { %v1286_v17 = vpop.eup %1285  ;;  %v972_v40 = vadd.f32 %v971_v10, %v970_v37  ;;  %v982_v46 = vadd.f32 %v981_v39, %v922_v45  ;;  %v811_v7 = vmax.f32 %v793_v12, 0.0 }
 0x275   :  { %v960_v48 = vadd.f32 1.0, %v1286_v17 }
 0x276   :  { %v973_v49 = vadd.f32 %v972_v40, %v1879_v33  ;;  %v923_v62 = vmul.f32 %v906_v47, %v811_v7 }
 0x277   :  { %1287 = vrcp.f32 %v960_v48 }
 0x278   :  { %v1004_v50 = vmul.f32 -1.442695, %v973_v49  ;;  %v983_v51 = vadd.f32 %v982_v46, %v923_v62 }
 0x27a   :  { %1289 = vpow2.f32 %v1004_v50  ;;  %v984_v59 = vrot.slane %v983_v51, 4 }
 0x27c   :  { %v985_v52 = vadd.f32 %v984_v59, %v983_v51 }
 0x27e   :  { %v986_v60 = vrot.slane %v985_v52, 2 }
 0x280   :  { %v987_v54 = vadd.f32 %v986_v60, %v985_v52 }
 0x281   :  { %v1288_v20 = vpop.eup %1287 }
 0x282   :  { %963 = vst [vmem:[%s1918_s7] sm:$0x2] %v1288_v20  ;;  %v988_v11 = vrot.slane %v987_v54, 1 }
 0x284   :  { %v1290_v55 = vpop.eup %1289  ;;  %v989_v63 = vadd.f32 %v988_v11, %v987_v54 }
 0x285   :  { %v977_v0 = vadd.f32 1.0, %v1290_v55 }
 0x286   :  { %v990_v56 = vadd.f32 %v989_v63, %v1879_v33 }
 0x287   :  { %1291 = vrcp.f32 %v977_v0 }
 0x288   :  { %v1005_v57 = vmul.f32 -1.442695, %v990_v56 }
 0x28a   :  { %1293 = vpow2.f32 %v1005_v57 }
 0x291   :  { %v1292_v3 = vpop.eup %1291 }
 0x292   :  { %980 = vst [vmem:[%s1918_s7] sm:$0x4] %v1292_v3 }
 0x294   :  { %v1294_v8 = vpop.eup %1293 }
 0x295   :  { %v994_v9 = vadd.f32 1.0, %v1294_v8 }
 0x297   :  { %1295 = vrcp.f32 %v994_v9 }
 0x2a1   :  { %v1296_v29 = vpop.eup %1295 }
 0x2a2   :  { %997 = vst [vmem:[%s1918_s7] sm:$0x8] %v1296_v29 }

</bundles_post_ra>
